<compile_context>
chip_gen: v5e
topology: v5e:2x2
jax: 0.10.0
libtpu: 0.0.40
codegen_flags: <defaults>
</compile_context>

<pallas_src>
import jax
import jax.numpy as jnp
from jax.experimental import pallas as pl
from jax.experimental.pallas import tpu as pltpu


def mlp_kernel(x_ref, w1_ref, b1_ref, w2_ref, b2_ref, o_ref):
    # x:  (1, N)   VMEM   batch on lanes
    # w1: (H, 1)   VMEM   hidden on sublanes
    # b1: (H, 1)   VMEM
    # w2: (H, 1)   VMEM
    # b2: (1, 1)   SMEM   scalar
    # o:  (1, N)   VMEM

    # Layer 1: depth-1 contraction as a pure VPU broadcast multiply + ReLU.
    h = jnp.maximum(w1_ref[...] * x_ref[...] + b1_ref[...], 0.0)      # (H, N)

    # Layer 2: width-1 matmul as VPU multiply + sublane reduction + scalar bias.
    y = jnp.sum(h * w2_ref[...], axis=0, keepdims=True) + b2_ref[0, 0]  # (1, N)

    o_ref[...] = y.astype(o_ref.dtype)


def prepare_params(w1, b1, w2, b2):
    """One-time parameter prep (hoisted out of the forward path).

    Converts parameters to the column layout the kernel expects:
      w1: (1, H) -> (H, 1);  b1: (H,) -> (H, 1);  w2: (H, 1) stays (H, 1);
      b2: (1,)   -> (1, 1)  (SMEM scalar).
    All reshapes are metadata-only for contiguous row-major data.
    """
    h = b1.shape[0]
    w1_c = jnp.reshape(w1.astype(jnp.float32), (h, 1))
    b1_c = jnp.reshape(b1.astype(jnp.float32), (h, 1))
    w2_c = jnp.reshape(w2.astype(jnp.float32), (h, 1))
    b2_s = jnp.reshape(b2.astype(jnp.float32), (1, 1))
    return w1_c, b1_c, w2_c, b2_s


@jax.jit
def net_forward(x, w1_c, b1_c, w2_c, b2_s):
    """x: (N, 1) f32; params pre-prepared by `prepare_params`. Returns (N, 1)."""
    n, f = x.shape
    assert f == 1, "kernel is specialized for n_feature == 1 (as in the spec)"

    # (N, 1) -> (1, N): metadata-only reshape, batch lands on the lane axis.
    x_row = jnp.reshape(x.astype(jnp.float32), (1, n))

    out = pl.pallas_call(
        mlp_kernel,
        out_shape=jax.ShapeDtypeStruct((1, n), jnp.float32),
        in_specs=[
            pl.BlockSpec(memory_space=pltpu.MemorySpace.VMEM),   # x   (1, N)
            pl.BlockSpec(memory_space=pltpu.MemorySpace.VMEM),   # w1  (H, 1)
            pl.BlockSpec(memory_space=pltpu.MemorySpace.VMEM),   # b1  (H, 1)
            pl.BlockSpec(memory_space=pltpu.MemorySpace.VMEM),   # w2  (H, 1)
            pl.BlockSpec(memory_space=pltpu.MemorySpace.SMEM),   # b2  scalar
        ],
        out_specs=pl.BlockSpec(memory_space=pltpu.MemorySpace.VMEM),
    )(x_row, w1_c, b1_c, w2_c, b2_s)

    # (1, N) -> (N, 1): metadata-only reshape.
    return jnp.reshape(out, (n, 1))


def init_params(key, n_feature, n_hidden, n_output):
    """PyTorch-style Linear init: U(-1/sqrt(fan_in), 1/sqrt(fan_in)).
    Weights stored as (in, out) (PyTorch weight transposed)."""
    k1, k2, k3, k4 = jax.random.split(key, 4)
    bound1 = 1.0 / jnp.sqrt(jnp.float32(n_feature))
    bound2 = 1.0 / jnp.sqrt(jnp.float32(n_hidden))
    w1 = jax.random.uniform(k1, (n_feature, n_hidden), jnp.float32, -bound1, bound1)
    b1 = jax.random.uniform(k2, (n_hidden,), jnp.float32, -bound1, bound1)
    w2 = jax.random.uniform(k3, (n_hidden, n_output), jnp.float32, -bound2, bound2)
    b2 = jax.random.uniform(k4, (n_output,), jnp.float32, -bound2, bound2)
    return w1, b1, w2, b2


if __name__ == "__main__":
    # Mirrors the script: x = unsqueeze(linspace(-1, 1, 100), dim=1) -> (100, 1)
    n_samples, n_feature, n_hidden, n_output = 100, 1, 32, 1

    x = jnp.expand_dims(jnp.linspace(-1.0, 1.0, n_samples, dtype=jnp.float32), axis=1)
    w1, b1, w2, b2 = init_params(jax.random.PRNGKey(0), n_feature, n_hidden, n_output)

    # One-time param prep (hoisted out of the per-call path).
    w1_c, b1_c, w2_c, b2_s = prepare_params(w1, b1, w2, b2)
    w1_c, b1_c, w2_c, b2_s = jax.block_until_ready((w1_c, b1_c, w2_c, b2_s))

    y = net_forward(x, w1_c, b1_c, w2_c, b2_s)
    y = jax.block_until_ready(y)

    # Pure-JAX reference for correctness.
    h_ref = jnp.maximum(x @ w1 + b1, 0.0)
    y_ref = h_ref @ w2 + b2
    assert y.shape == (n_samples, n_output)
    assert jnp.allclose(y, y_ref, atol=1e-5, rtol=1e-5)

    print("KERNEL_OK")
</pallas_src>

<mosaic_0001>
module attributes {stable_mosaic.version = 11 : i64} {
  func.func @mlp_kernel(%arg0: memref<1x100xf32, #tpu.memory_space<vmem>>, %arg1: memref<32x1xf32, #tpu.memory_space<vmem>>, %arg2: memref<32x1xf32, #tpu.memory_space<vmem>>, %arg3: memref<32x1xf32, #tpu.memory_space<vmem>>, %arg4: memref<1x1xf32, #tpu.memory_space<smem>>, %arg5: memref<1x100xf32, #tpu.memory_space<vmem>>) attributes {dimension_semantics = [], scalar_prefetch = 0 : i64, scratch_operands = 0 : i64, tpu.core_type = #tpu.core_type<tc>} {
    %c0 = arith.constant 0 : index
    %c0_0 = arith.constant 0 : index
    %0 = vector.load %arg1[%c0, %c0_0] : memref<32x1xf32, #tpu.memory_space<vmem>>, vector<32x1xf32>
    %c0_1 = arith.constant 0 : index
    %c0_2 = arith.constant 0 : index
    %1 = vector.load %arg0[%c0_1, %c0_2] : memref<1x100xf32, #tpu.memory_space<vmem>>, vector<1x100xf32>
    %2 = vector.broadcast %0 : vector<32x1xf32> to vector<32x100xf32>
    %3 = vector.broadcast %1 : vector<1x100xf32> to vector<32x100xf32>
    %4 = arith.mulf %2, %3 : vector<32x100xf32>
    %c0_3 = arith.constant 0 : index
    %c0_4 = arith.constant 0 : index
    %5 = vector.load %arg2[%c0_3, %c0_4] : memref<32x1xf32, #tpu.memory_space<vmem>>, vector<32x1xf32>
    %6 = vector.broadcast %5 : vector<32x1xf32> to vector<32x100xf32>
    %7 = arith.addf %4, %6 : vector<32x100xf32>
    %cst = arith.constant 0.000000e+00 : f32
    %8 = vector.broadcast %cst : f32 to vector<32x100xf32>
    %9 = arith.maximumf %7, %8 : vector<32x100xf32>
    %c0_5 = arith.constant 0 : index
    %c0_6 = arith.constant 0 : index
    %10 = vector.load %arg3[%c0_5, %c0_6] : memref<32x1xf32, #tpu.memory_space<vmem>>, vector<32x1xf32>
    %11 = vector.broadcast %10 : vector<32x1xf32> to vector<32x100xf32>
    %12 = arith.mulf %9, %11 : vector<32x100xf32>
    %cst_7 = arith.constant dense<0.000000e+00> : vector<100xf32>
    %13 = vector.multi_reduction <add>, %12, %cst_7 [0] : vector<32x100xf32> to vector<100xf32>
    %14 = vector.shape_cast %13 : vector<100xf32> to vector<1x100xf32>
    %c0_8 = arith.constant 0 : index
    %c0_9 = arith.constant 0 : index
    %15 = memref.load %arg4[%c0_8, %c0_9] : memref<1x1xf32, #tpu.memory_space<smem>>
    %16 = vector.broadcast %15 : f32 to vector<1x100xf32>
    %17 = arith.addf %14, %16 : vector<1x100xf32>
    %c0_10 = arith.constant 0 : index
    %c0_11 = arith.constant 0 : index
    %18 = vector.load %arg5[%c0_10, %c0_11] : memref<1x100xf32, #tpu.memory_space<vmem>>, vector<1x100xf32>
    tpu.vector_store %arg5[%c0_10, %c0_11], %17 {strides = array<i32>} : memref<1x100xf32, #tpu.memory_space<vmem>>, vector<1x100xf32>,
    return
  }
}

</mosaic_0001>

<bundles_post_ra>
// kernel: net_forward.1
= control target key start
LH: loop header
LB: loop body
LE: loop exit
PB: predicated region body
PF: predicated region fallthrough
CT: control target
= control target key end

     0   :  { %v181_v2 = vmov 0   ;;  %s258_s0 = inlined_call_operand.vmem [shape: f32[1,100], index: 0, kind: input, shape index: {}]   ;;  %s259_s1 = inlined_call_operand.vmem [shape: f32[32,1], index: 1, kind: input, shape index: {}]   ;;  %s260_s2 = inlined_call_operand.vmem [shape: f32[32,1], index: 2, kind: input, shape index: {}]   ;;  %s261_s3 = inlined_call_operand.vmem [shape: f32[32,1], index: 3, kind: input, shape index: {}]   ;;  %s262_s4 = inlined_call_operand.<no memory space> [shape: f32[1,1], index: 4, kind: input, shape index: {}]   ;;  %s263_s5 = inlined_call_operand.hbm [shape: f32[1,100], index: 5, kind: output, shape index: {}]  }
   0x1   :  { %v24_v0 = vld [vmem:[%s259_s1 + $0x10] sm:$0xff]  ;;  %v22_v1 = vld [vmem:[%s259_s1] sm:$0xff]  ;;  %152 = vset.pattern.permute.xlu1 %v181_v2  ;;  %151 = vset.pattern.permute.xlu0 %v181_v2  ;;  %v55_v3 = vld [vmem:[%s260_s2 + $0x8] sm:$0xff] }
   0x2   :  { %39 = vperm.xlu1 %152, %v24_v0   ;;  %29 = vperm.xlu0 %151, %v22_v1  }
   0x3   :  { %153 = vset.pattern.permute.xlu2 %v181_v2 }
   0x4   :  { %65 = vperm.xlu2 %153, %v55_v3  }
   0x5   :  { %11 = vsyncpa [#allocation4], 0  ;;  %v54_v4 = vld [vmem:[%s260_s2] sm:$0xff]  ;;  %v23_v5 = vld [vmem:[%s259_s1 + $0x8] sm:$0xff]  ;;  %vm114_vm0 = vcmask 818176   ;;  %v129_v54 = vstv %s262_s4  ;;  %s182_s17 = smov [#allocation3]  }
   0x6   :  { %v25_v6 = vld [vmem:[%s259_s1 + $0x18] sm:$0xff]  ;;  %v56_v8 = vld [vmem:[%s260_s2 + $0x10] sm:$0xff]  ;;  %v86_v9 = vld [vmem:[%s261_s3] sm:$0xff]  ;;  %s138_s18 = sshll.u32 %s182_s17, 4  ;;  %s140_s21 = sshll.u32 %s263_s5, 4  ;;  %vm131_vm1 = vcmask 811008   ;;  %s139_s18 = int_to_ptr.vmem [resolvable:$true] %s138_s18  ;;  %s141_s21 = int_to_ptr.hbm [resolvable:$true] %s140_s21 }
   0x7   :  { %v57_v7 = vld [vmem:[%s260_s2 + $0x18] sm:$0xff]  ;;  %v88_v10 = vld [vmem:[%s261_s3 + $0x10] sm:$0xff]  ;;  %v87_v11 = vld [vmem:[%s261_s3 + $0x8] sm:$0xff] }
   0x8   :  { %v89_v12 = vld [vmem:[%s261_s3 + $0x18] sm:$0xff]  ;;  %v154_v19 = vld [vmem:[%s258_s0] ss:$0 sm:$0xff] }
   0xa   :  { %60 = vperm.xlu1 %152, %v54_v4   ;;  %34 = vperm.xlu0 %151, %v23_v5  }
   0xc   :  { %44 = vperm.xlu2 %153, %v25_v6  }
  0x12   :  { %75 = vperm.xlu1 %152, %v57_v7   ;;  %70 = vperm.xlu0 %151, %v56_v8  }
  0x14   :  { %92 = vperm.xlu2 %153, %v86_v9  }
  0x1a   :  { %102 = vperm.xlu1 %152, %v88_v10   ;;  %97 = vperm.xlu0 %151, %v87_v11  }
  0x1c   :  { %107 = vperm.xlu2 %153, %v89_v12  }
  0x5e   :  { %v66_v13 = vpop.permute.xlu2 %65 }
  0x66   :  { %v45_v16 = vpop.permute.xlu2 %44 }
  0x67   :  { %v53_v26 = vmul.f32 %v154_v19, %v45_v16 }
  0x6e   :  { %v93_v21 = vpop.permute.xlu2 %92 }
  0x74   :  { %v40_v14 = vpop.permute.xlu1 %39  ;;  %v30_v15 = vpop.permute.xlu0 %29 }
  0x75   :  { %v50_v20 = vmul.f32 %v154_v19, %v30_v15  ;;  %v52_v27 = vmul.f32 %v154_v19, %v40_v14 }
  0x76   :  { %v108_v40 = vpop.permute.xlu2 %107 }
  0x7c   :  { %v61_v17 = vpop.permute.xlu1 %60  ;;  %v35_v18 = vpop.permute.xlu0 %34 }
  0x7d   :  { %v78_v22 = vadd.f32 %v61_v17, %v50_v20  ;;  %v51_v23 = vmul.f32 %v154_v19, %v35_v18 }
  0x7f   :  { %v82_v28 = vmax.f32 %v78_v22, 0.0  ;;  %v79_v29 = vadd.f32 %v66_v13, %v51_v23 }
  0x81   :  { %v110_v32 = vmul.f32 %v93_v21, %v82_v28  ;;  %v83_v35 = vmax.f32 %v79_v29, 0.0 }
  0x83   :  { %v115_v42 = vsel %vm114_vm0, %v110_v32, 0.0 }
  0x84   :  { %v76_v24 = vpop.permute.xlu1 %75  ;;  %v71_v25 = vpop.permute.xlu0 %70 }
  0x85   :  { %v81_v30 = vadd.f32 %v76_v24, %v53_v26  ;;  %v80_v31 = vadd.f32 %v71_v25, %v52_v27 }
  0x87   :  { %v85_v33 = vmax.f32 %v81_v30, 0.0  ;;  %v84_v34 = vmax.f32 %v80_v31, 0.0 }
  0x89   :  { %v113_v41 = vmul.f32 %v108_v40, %v85_v33 }
  0x8b   :  { %v120_v47 = vsel %vm114_vm0, %v113_v41, 0.0 }
  0x8c   :  { %v103_v36 = vpop.permute.xlu1 %102  ;;  %v98_v37 = vpop.permute.xlu0 %97 }
  0x8d   :  { %v112_v38 = vmul.f32 %v103_v36, %v84_v34  ;;  %v111_v39 = vmul.f32 %v98_v37, %v83_v35 }
  0x8f   :  { %v116_v43 = vsel %vm114_vm0, %v111_v39, 0.0  ;;  %v118_v45 = vsel %vm114_vm0, %v112_v38, 0.0 }
  0x90   :  { %v117_v44 = vadd.f32 %v116_v43, %v115_v42 }
  0x92   :  { %v119_v46 = vadd.f32 %v118_v45, %v117_v44 }
  0x94   :  { %v121_v48 = vadd.f32 %v120_v47, %v119_v46 }
  0x96   :  { %v122_v49 = vrot.slane %v121_v48, 4 }
  0x98   :  { %v123_v50 = vadd.f32 %v122_v49, %v121_v48 }
  0x9a   :  { %v124_v51 = vrot.slane %v123_v50, 2 }
  0x9c   :  { %v125_v52 = vadd.f32 %v124_v51, %v123_v50 }
  0x9e   :  { %v126_v53 = vrot.slane %v125_v52, 1 }
  0xa0   :  { %v127_v55 = vadd.f32 %v126_v53, %v125_v52 }
  0xa2   :  { %v130_v56 = vadd.f32 %v129_v54, %v127_v55 }
  0xa4   :  { %132 = vst.msk [vmem:[#allocation3] sm:$0x1] %vm131_vm1, %v130_v56 }
  0xa5   :  { %143 = dma.vmem_to_hbm [thread:$0]  %s139_s18, 16, %s141_s21, [#allocation4]  }
  0xa6   :  { %179 = dma.done.wait [#allocation4], 16  }
  0xa7   :  { %180 = vsyncadd [#allocation4], 4294967280 }
  0xa8   :  { %148 = vsyncpa [#allocation4], 1 }

</bundles_post_ra>
